<compile_context>
chip_gen: v6e
topology: v6e:2x2x1
jax: 0.10.0
libtpu: 0.0.40
codegen_flags: <defaults>
</compile_context>

<pallas_src>
import math

import jax
import jax.numpy as jnp
from jax.experimental import pallas as pl
from jax.experimental.pallas import tpu as pltpu

_MIB = 1024 * 1024


def _layer_scale_kernel(x_ref, gamma_ref, o_ref):
    # x_ref: (tm, tn) tile of (folded) rows; gamma_ref: (1, tn) fp32 row.
    # Compute in fp32 so bf16 activations don't round the tiny fp32 gamma.
    x = x_ref[...].astype(jnp.float32)
    o_ref[...] = (x * gamma_ref[...]).astype(o_ref.dtype)


def _sublane_multiple(dtype) -> int:
    # Rows-per-sublane packing: 8 for 4-byte, 16 for 2-byte, 32 for 1-byte.
    itemsize = jnp.dtype(dtype).itemsize
    return max(8, 32 // max(itemsize, 1))


def _vmem_capacity_bytes() -> int:
    try:
        info = pltpu.get_tpu_info()
        cap = int(getattr(info, "vmem_capacity_bytes", 0) or 0)
        if cap > 0:
            return cap
    except Exception:
        pass
    return 64 * _MIB  # conservative fallback: v7x per-TensorCore VMEM


def layer_scale(x: jax.Array, gamma: jax.Array, *,
                donate_x: bool = False,
                target_tile_bytes=None) -> jax.Array:
    """y = x * gamma with gamma (dim,) broadcast along the last axis of x."""
    orig_shape = x.shape
    dim = orig_shape[-1]
    assert gamma.shape == (dim,)
    dtype = x.dtype
    itemsize = jnp.dtype(dtype).itemsize

    rows = 1
    for s in orig_shape[:-1]:
        rows *= s

    x2 = x.reshape(rows, dim)                    # contiguous reshape: free
    g_f32 = gamma.astype(jnp.float32)

    # --- Lane-densify when dim is not a multiple of 128 ----------------------
    rows_lane, d_lane = rows, dim
    g_row = g_f32
    if dim % 128 != 0:
        k = 128 // math.gcd(dim, 128)            # smallest k: (k*dim) % 128 == 0
        if k > 1 and rows % k == 0:
            rows_lane = rows // k
            d_lane = dim * k
            x2 = x2.reshape(rows_lane, d_lane)   # row-major contiguous: free
            g_row = jnp.tile(g_f32, (k,))        # gamma repeats with period dim
        # TODO(synk): when rows % k != 0, route the divisible prefix through the
        # lane-dense path and only the <k-row tail through a masked-store call;
        # skipped because the XLA slice+concat needed to stitch the halves back
        # costs an extra HBM pass that outweighs the store-side win.
    g2 = g_row.reshape(1, d_lane)

    # --- Generation-aware VMEM budget / tile target ---------------------------
    phys_vmem = _vmem_capacity_bytes()
    if phys_vmem >= 96 * _MIB:      # v5e / v6e: 128 MiB physical VMEM
        vmem_budget = 64 * _MIB
        default_tile = 12 * _MIB
    else:                           # v7x: 64 MiB per-TensorCore VMEM
        vmem_budget = 44 * _MIB
        default_tile = 7 * _MIB
    if target_tile_bytes is None:
        target_tile_bytes = default_tile

    sub = _sublane_multiple(dtype)
    slack = 2 * _MIB

    def _tiles_bytes(tm_, tn_):
        # x-in + out double-buffered (4 tiles) + fp32 gamma block double-buffered.
        return 4 * tm_ * tn_ * itemsize + 2 * tn_ * 4

    # --- Lane (last-dim) blocking only for very wide rows ---------------------
    min_tm = min(rows_lane, sub)
    tn = d_lane
    if d_lane > 128 and _tiles_bytes(min_tm, d_lane) > vmem_budget - slack:
        per_col = _tiles_bytes(min_tm, 1)
        tn = max(128, ((vmem_budget - slack) // per_col) // 128 * 128)
        tn = min(tn, d_lane)

    # --- Row tile: ~target_tile_bytes per block, capped by the VMEM budget ----
    tm = max(1, target_tile_bytes // max(tn * itemsize, 1))
    max_tm_budget = max(sub, ((vmem_budget - slack - 2 * tn * 4)
                              // (4 * tn * itemsize)) // sub * sub)
    tm = min(tm, max_tm_budget, rows_lane)
    if tm < rows_lane:
        # Block second-to-last dim must be a multiple of the sublane packing
        # (or equal to the full array extent).
        tm = max(sub, (tm // sub) * sub)
        tm = min(tm, rows_lane)

    # --- Ensure enough grid steps to feed both v7x TensorCores ----------------
    MIN_STEPS = 8
    if (rows_lane >= MIN_STEPS * sub
            and pl.cdiv(rows_lane, MIN_STEPS) * tn * itemsize >= 1 * _MIB):
        cap = max(sub, (pl.cdiv(rows_lane, MIN_STEPS) // sub) * sub)
        tm = min(tm, cap)

    grid = (pl.cdiv(rows_lane, tm), pl.cdiv(d_lane, tn))  # ragged tails masked

    vmem_needed = _tiles_bytes(tm, tn) + slack
    # Never clamp the limit below the actual double-buffered footprint.
    vmem_limit = min(phys_vmem, max(vmem_budget, vmem_needed))

    bytes_accessed = 2 * rows * dim * itemsize + d_lane * 4

    kwargs = {}
    if donate_x:
        # inplace=True analogue: alias x's buffer as the output (caller must
        # actually donate x, e.g. via jax.jit(..., donate_argnums=...)).
        kwargs["input_output_aliases"] = {0: 0}

    out = pl.pallas_call(
        _layer_scale_kernel,
        out_shape=jax.ShapeDtypeStruct((rows_lane, d_lane), dtype),
        grid_spec=pltpu.PrefetchScalarGridSpec(
            num_scalar_prefetch=0,
            grid=grid,
            in_specs=[
                pl.BlockSpec((tm, tn), lambda i, j: (i, j)),
                # Constant row index -> gamma fetched once per lane block and
                # kept resident across the row axis of the grid.
                pl.BlockSpec((1, tn), lambda i, j: (0, j)),
            ],
            out_specs=pl.BlockSpec((tm, tn), lambda i, j: (i, j)),
        ),
        compiler_params=pltpu.CompilerParams(
            dimension_semantics=("parallel", "parallel"),
            vmem_limit_bytes=int(vmem_limit),
        ),
        cost_estimate=pl.CostEstimate(
            flops=rows * dim,
            transcendentals=0,
            bytes_accessed=int(bytes_accessed),
        ),
        **kwargs,
    )(x2, g2)

    return out.reshape(orig_shape)


if __name__ == "__main__":
    # Module __init__: dim=32, init_values=1e-5 -> gamma = 1e-5 * ones(dim)
    dim = 32
    init_values = 1e-5
    gamma = init_values * jnp.ones((dim,), dtype=jnp.float32)

    # Example input: (batch=2, seq=8, hidden=32)
    key = jax.random.PRNGKey(0)
    x = jax.random.normal(key, (2, 8, dim), dtype=jnp.float32)

    y = jax.block_until_ready(layer_scale(x, gamma))
    ref = x * gamma
    assert y.shape == x.shape and y.dtype == x.dtype
    assert jnp.allclose(y, ref, atol=1e-6, rtol=1e-6)

    # D already a multiple of 128 (no lane folding path).
    dim2 = 128
    gamma2 = init_values * jnp.ones((dim2,), dtype=jnp.float32)
    x2 = jax.random.normal(jax.random.PRNGKey(0), (2, 8, dim2), dtype=jnp.float32)
    y2 = jax.block_until_ready(layer_scale(x2, gamma2))
    assert jnp.allclose(y2, x2 * gamma2, atol=1e-6, rtol=1e-6)

    # Ragged fallback path: rows (=6) not divisible by fold factor k (=4).
    x3 = jax.random.normal(jax.random.PRNGKey(0), (3, 2, dim), dtype=jnp.float32)
    y3 = jax.block_until_ready(layer_scale(x3, gamma))
    assert jnp.allclose(y3, x3 * gamma, atol=1e-6, rtol=1e-6)

    # bf16 activations with fp32 gamma: multiply is done in fp32 in-kernel.
    x4 = jax.random.normal(jax.random.PRNGKey(0), (2, 8, dim), dtype=jnp.bfloat16)
    y4 = jax.block_until_ready(layer_scale(x4, gamma))
    ref4 = (x4.astype(jnp.float32) * gamma).astype(jnp.bfloat16)
    assert y4.dtype == jnp.bfloat16
    assert jnp.allclose(y4.astype(jnp.float32), ref4.astype(jnp.float32),
                        atol=1e-8, rtol=1e-2)

    print("KERNEL_OK")
</pallas_src>

<mosaic_0001>
module attributes {stable_mosaic.version = 11 : i64} {
  func.func @_layer_scale_kernel(%arg0: i32, %arg1: i32, %arg2: memref<4x128xf32, #tpu.memory_space<vmem>>, %arg3: memref<1x128xf32, #tpu.memory_space<vmem>>, %arg4: memref<4x128xf32, #tpu.memory_space<vmem>>) attributes {dimension_semantics = [#tpu.dimension_semantics<parallel>, #tpu.dimension_semantics<parallel>], iteration_bounds = array<i64: 1, 1>, scalar_prefetch = 0 : i64, scratch_operands = 0 : i64, tpu.core_type = #tpu.core_type<tc>, window_params = [{transform_indices = @transform_0, window_bounds = array<i64: 4, 128>}, {transform_indices = @transform_1, window_bounds = array<i64: 1, 128>}, {transform_indices = @transform_2, window_bounds = array<i64: 4, 128>}]} {
    %c0 = arith.constant 0 : index
    %c0_0 = arith.constant 0 : index
    %0 = vector.load %arg2[%c0, %c0_0] : memref<4x128xf32, #tpu.memory_space<vmem>>, vector<4x128xf32>
    %c0_1 = arith.constant 0 : index
    %c0_2 = arith.constant 0 : index
    %1 = vector.load %arg3[%c0_1, %c0_2] : memref<1x128xf32, #tpu.memory_space<vmem>>, vector<1x128xf32>
    %2 = vector.broadcast %1 : vector<1x128xf32> to vector<4x128xf32>
    %3 = arith.mulf %0, %2 : vector<4x128xf32>
    %c0_3 = arith.constant 0 : index
    %c0_4 = arith.constant 0 : index
    %4 = vector.load %arg4[%c0_3, %c0_4] : memref<4x128xf32, #tpu.memory_space<vmem>>, vector<4x128xf32>
    tpu.vector_store %arg4[%c0_3, %c0_4], %3 {strides = array<i32>} : memref<4x128xf32, #tpu.memory_space<vmem>>, vector<4x128xf32>,
    return
  }
  func.func @transform_0(%arg0: i32, %arg1: i32) -> (i32, i32) {
    %c0_i32 = arith.constant 0 : i32
    return %arg0, %arg1 : i32, i32
  }
  func.func @transform_1(%arg0: i32, %arg1: i32) -> (i32, i32) {
    %c0_i32 = arith.constant 0 : i32
    %c0_i32_0 = arith.constant 0 : i32
    return %c0_i32, %arg1 : i32, i32
  }
  func.func @transform_2(%arg0: i32, %arg1: i32) -> (i32, i32) {
    %c0_i32 = arith.constant 0 : i32
    return %arg0, %arg1 : i32, i32
  }
}

</mosaic_0001>

<bundles_post_ra>
// kernel: tpu_custom_call.1
= control target key start
LH: loop header
LB: loop body
LE: loop exit
PB: predicated region body
PF: predicated region fallthrough
CT: control target
= control target key end

     0   :  { %7 = vsyncpa [#allocation3], 0  ;;  %s122_s0 = inlined_call_operand.hbm [shape: f32[4,128], index: 0, kind: input, shape index: {}]   ;;  %s123_s1 = inlined_call_operand.vmem [shape: f32[1,128], index: 1, kind: input, shape index: {}]   ;;  %s124_s2 = inlined_call_operand.hbm [shape: f32[4,128], index: 2, kind: output, shape index: {}]  }
   0x1   :  { %8 = vsyncpa [#allocation4], 0  ;;  %s96_s9 = smov [#allocation2]  }
   0x2   :  { %s15_s10 = sshll.u32 %s96_s9, 4  ;;  %s16_s10 = int_to_ptr.vmem [resolvable:$true] %s15_s10 }
   0x3   :  { %s60_s11 = scalar_lea.vmem %s16_s10, 64  ;;  %p65_p1 = scmp.lt.s32.totalorder %s16_s10, %s16_s10 }
   0x4   :  { %p61_p0 = scmp.ne.s32.totalorder %s16_s10, %s60_s11  ;;  %p66_p2 = scmp.lt.s32.totalorder %s60_s11, %s60_s11 }
   0x6   :  { %p67_p3 = por %p66_p2, %p65_p1 }
   0x8   :  { %p68_p4 = pnand %p67_p3, %p61_p0 }
   0xa   :  { %71 = shalt.err (!%p68_p4)
}
   0xb   :  { %18 = dma.hbm_to_vmem [thread:$0]  %s122_s0, 64, %s16_s10, [#allocation3]  }
   0xc   :  { %92 = dma.done.wait [#allocation3], 64  }
   0xd   :  { %93 = vsyncadd [#allocation3], 4294967232  ;;  %s97_s14 = smov [#allocation5]   ;;  %v24_v0 = vld [vmem:[#allocation2] sm:$0xf] }
   0xe   :  { %s40_s15 = sshll.u32 %s97_s14, 4  ;;  %v49_v1 = vld [vmem:[%s123_s1] ss:$0 sm:$0xff]  ;;  %s41_s15 = int_to_ptr.vmem [resolvable:$true] %s40_s15 }
   0xf   :  { %v32_v2 = vmul.f32 %v49_v1, %v24_v0  ;;  %s72_s18 = scalar_lea.vmem %s41_s15, 64  ;;  %p77_p6 = scmp.lt.s32.totalorder %s41_s15, %s41_s15 }
  0x10   :  { %p73_p5 = scmp.ne.s32.totalorder %s41_s15, %s72_s18  ;;  %p78_p7 = scmp.lt.s32.totalorder %s72_s18, %s72_s18 }
  0x11   :  { %33 = vst [vmem:[#allocation5] sm:$0xf] %v32_v2 }
  0x12   :  { %p79_p8 = por %p78_p7, %p77_p6 }
  0x14   :  { %p80_p9 = pnand %p79_p8, %p73_p5 }
  0x16   :  { %83 = shalt.err (!%p80_p9)
}
  0x17   :  { %43 = dma.vmem_to_hbm [thread:$0]  %s41_s15, 64, %s124_s2, [#allocation4]  }
  0x18   :  { %94 = dma.done.wait [#allocation4], 64  }
  0x19   :  { %95 = vsyncadd [#allocation4], 4294967232 }
  0x1a   :  { %47 = vsyncpa [#allocation3], 1 }
  0x1b   :  { %48 = vsyncpa [#allocation4], 1 }

</bundles_post_ra>
